<compile_context>
chip_gen: v6e
topology: v6e:2x2x1
jax: 0.10.0
libtpu: 0.0.40
codegen_flags: <defaults>
</compile_context>

<pallas_src>
import functools

import jax
import jax.numpy as jnp
from jax.experimental import pallas as pl
from jax.experimental.pallas import tpu as pltpu

NEGATIVE_SLOPE = 0.2
_RUNNING_MAX_INIT = -1e30  # finite "-inf" init for the online-softmax running max


# --------------------------------------------------------------------------
# Tiling / hardware helpers
# --------------------------------------------------------------------------
def _largest_tile(n, target, align):
    """Largest divisor of n that is <= target and a multiple of `align`
    (falls back to n, which is always legal as a full-extent block)."""
    for t in range(min(n, target), 0, -1):
        if n % t == 0 and t % align == 0:
            return t
    return n


def _tpu_vmem_capacity_bytes():
    try:
        return int(pltpu.get_tpu_info().vmem_capacity_bytes)
    except Exception:
        return None


def _vmem_limit_bytes():
    cap = _tpu_vmem_capacity_bytes()
    if cap is None:
        return None               # keep the compiler default
    return (cap * 3) // 4         # leave headroom below physical VMEM


def _default_tile_caps():
    cap = _tpu_vmem_capacity_bytes()
    if cap is not None and cap <= (64 << 20):   # v7x-class: 64 MiB per TensorCore
        return 256, 512
    return 512, 512                             # v5e / v6e: 128 MiB VMEM


def _auto_tiles(n):
    cap_v, cap_u = _default_tile_caps()
    # Keep >= 2 destination tiles when possible so the "parallel" dst axis can
    # be sharded across v7x's two TensorCores (harmless loop on 1-TC chips).
    tgt_v = min(cap_v, n // 2) if n >= 64 else n
    tile_v = _largest_tile(n, max(tgt_v, 32), align=32)   # int8 adj: 32-sublane align
    tile_u = _largest_tile(n, cap_u, align=128)           # lane dim: 128 align
    return tile_v, tile_u


# --------------------------------------------------------------------------
# Kernel 1: fused projection for all heads + folded el/er columns.
#   out = x @ [W_all | W@attn_l | W@attn_r | 0-pad]   -> (tile_m, C_pad)
# --------------------------------------------------------------------------
def _proj_kernel(x_ref, w_ref, o_ref):
    o_ref[...] = jnp.dot(x_ref[...], w_ref[...],
                         preferred_element_type=jnp.float32)


def _proj_call(x, w_ext, tile_m, single_buffer):
    N, D_in = x.shape
    C = w_ext.shape[1]
    if single_buffer:
        # Grid-invariant weight: no point double-buffering it.
        w_spec = pl.BlockSpec((D_in, C), lambda i: (0, 0),
                              pipeline_mode=pl.Buffered(1))
    else:
        w_spec = pl.BlockSpec((D_in, C), lambda i: (0, 0))
    return pl.pallas_call(
        _proj_kernel,
        out_shape=jax.ShapeDtypeStruct((N, C), jnp.float32),
        grid_spec=pltpu.PrefetchScalarGridSpec(
            num_scalar_prefetch=0,
            grid=(N // tile_m,),
            in_specs=[pl.BlockSpec((tile_m, D_in), lambda i: (i, 0)), w_spec],
            out_specs=pl.BlockSpec((tile_m, C), lambda i: (i, 0))),
        compiler_params=pltpu.CompilerParams(
            dimension_semantics=("parallel",)),
        cost_estimate=pl.CostEstimate(
            flops=2 * N * D_in * C,
            transcendentals=0,
            bytes_accessed=4 * (N * D_in + D_in * C + N * C)),
    )(x, w_ext)


# --------------------------------------------------------------------------
# Kernel 2: dst-tile x src-tile grid, online-softmax edge attention + aggregation.
# --------------------------------------------------------------------------
def _attn_kernel(occ_ref, el_ref, er_ref, f_ref, adj_ref, bias_ref, out_ref,
                 m_scr, l_scr, acc_scr, *, num_heads):
    i = pl.program_id(0)          # destination tile
    j = pl.program_id(1)          # source tile (reduction axis)

    @pl.when(j == 0)
    def _init():
        m_scr[...] = jnp.full_like(m_scr, _RUNNING_MAX_INIT)
        l_scr[...] = jnp.zeros_like(l_scr)
        acc_scr[...] = jnp.zeros_like(acc_scr)

    # Skip all compute for (dst, src) blocks with no edges (block-sparse graphs).
    @pl.when(occ_ref[i, j] > 0)
    def _compute():
        adj_f = adj_ref[...].astype(jnp.float32)          # (tile_v, tile_u), shared by heads
        el = el_ref[...]                                  # (H, tile_u)  f32
        er = er_ref[...]                                  # (tile_v, H)  f32
        for h in range(num_heads):                        # H is small, static unroll
            e = el[h:h + 1, :] + er[:, h:h + 1]           # (tile_v, tile_u)
            e = jnp.maximum(e, NEGATIVE_SLOPE * e)        # leaky_relu
            m_prev = m_scr[:, h:h + 1]                    # (tile_v, 1)
            m_new = jnp.maximum(m_prev, jnp.max(e, axis=-1, keepdims=True))
            corr = jnp.exp(m_prev - m_new)                # rescale previous partials
            p = jnp.exp(e - m_new) * adj_f                # multiplicative edge mask
            l_scr[:, h:h + 1] = corr * l_scr[:, h:h + 1] + jnp.sum(
                p, axis=-1, keepdims=True)
            # bf16 operands for the MXU aggregation matmul, f32 accumulation.
            acc_scr[h] = corr * acc_scr[h] + jnp.dot(
                p.astype(jnp.bfloat16), f_ref[h],
                preferred_element_type=jnp.float32)
            m_scr[:, h:h + 1] = m_new

    @pl.when(j == pl.num_programs(1) - 1)
    def _finalize():
        l = l_scr[...]                                    # (tile_v, H)
        inv = pl.reciprocal(l, approx=True)               # EUP slot
        inv = inv * (2.0 - l * inv)                       # one Newton step
        rst = jnp.concatenate(
            [acc_scr[h] * inv[:, h:h + 1] for h in range(num_heads)], axis=-1)
        out_ref[...] = (rst + bias_ref[...]).astype(out_ref.dtype)  # lane-dense store


def _attn_call(occ, el_t, er, f_hnd, adj, bias2d, tile_v, tile_u,
               num_heads, d_out, single_buffer):
    H = num_heads
    N = adj.shape[0]
    HD = H * d_out
    nv, nu = N // tile_v, N // tile_u

    if single_buffer:
        bias_spec = pl.BlockSpec((1, HD), lambda i, j, o: (0, 0),
                                 pipeline_mode=pl.Buffered(1))
    else:
        bias_spec = pl.BlockSpec((1, HD), lambda i, j, o: (0, 0))

    return pl.pallas_call(
        functools.partial(_attn_kernel, num_heads=H),
        out_shape=jax.ShapeDtypeStruct((N, HD), jnp.float32),
        grid_spec=pltpu.PrefetchScalarGridSpec(
            num_scalar_prefetch=1,                        # block-occupancy table
            grid=(nv, nu),
            in_specs=[
                pl.BlockSpec((H, tile_u), lambda i, j, o: (0, j)),           # el
                pl.BlockSpec((tile_v, H), lambda i, j, o: (i, 0)),           # er
                pl.BlockSpec((H, tile_u, d_out), lambda i, j, o: (0, j, 0)),  # f (bf16)
                pl.BlockSpec((tile_v, tile_u), lambda i, j, o: (i, j)),      # adj (int8)
                bias_spec,                                                   # bias
            ],
            out_specs=pl.BlockSpec((tile_v, HD), lambda i, j, o: (i, 0)),
            scratch_shapes=[
                pltpu.VMEM((tile_v, H), jnp.float32),          # running max m
                pltpu.VMEM((tile_v, H), jnp.float32),          # running sum l
                pltpu.VMEM((H, tile_v, d_out), jnp.float32),   # acc
            ]),
        compiler_params=pltpu.CompilerParams(
            dimension_semantics=("parallel", "arbitrary"),
            vmem_limit_bytes=_vmem_limit_bytes()),
        cost_estimate=pl.CostEstimate(
            flops=2 * N * N * HD + 10 * N * N * H,
            transcendentals=N * N * H,
            bytes_accessed=N * N + nv * N * (2 * HD + 4 * H)
                           + nu * N * 4 * H + 4 * N * HD),
    )(occ, el_t, er, f_hnd, adj, bias2d)


# --------------------------------------------------------------------------
# Wrapper
# --------------------------------------------------------------------------
def gat_conv_pallas(x, w_per_head, attn_l, attn_r, adj, bias,
                    tile_m=None, tile_v=None, tile_u=None,
                    block_occupancy=None):
    """x: (N, D_in); w_per_head: (H, D_in, D_out); attn_l/attn_r/bias: (H, D_out);
    adj: (N, N) int8/bool mask with adj[v, u] = 1 for edge u -> v.
    Returns (N, H, D_out)."""
    N, D_in = x.shape
    H, _, D_out = w_per_head.shape
    HD = H * D_out

    # The adjacency should arrive as a compact int8/bool mask so no per-call
    # N^2 re-encoding pass is needed; cast only if a float mask was passed.
    if adj.dtype != jnp.int8:
        adj = (adj > 0).astype(jnp.int8)

    # ---- fold all heads + attn_l / attn_r reductions into one weight, pad to
    # a 128-lane multiple so kernel 1's single output slab is lane-dense ------
    w_all = jnp.transpose(w_per_head, (1, 0, 2)).reshape(D_in, HD)
    w_el = jnp.einsum('hio,ho->ih', w_per_head, attn_l)          # (D_in, H)
    w_er = jnp.einsum('hio,ho->ih', w_per_head, attn_r)          # (D_in, H)
    C = HD + 2 * H
    C_pad = ((C + 127) // 128) * 128
    w_ext = jnp.concatenate(
        [w_all, w_el, w_er, jnp.zeros((D_in, C_pad - C), jnp.float32)],
        axis=1).astype(jnp.float32)

    # ---- kernel 1: fused projection over node tiles -------------------------
    if tile_m is None:
        tile_m = _largest_tile(N, min(512, max(8, N // 2)), align=8)
    assert N % tile_m == 0, "tile_m must divide N"
    try:
        fe = _proj_call(x.astype(jnp.float32), w_ext, tile_m, True)
    except Exception:   # installed Pallas build rejects pipeline_mode / Buffered(1)
        fe = _proj_call(x.astype(jnp.float32), w_ext, tile_m, False)

    # Tiny (N, *) reshuffles done once in XLA (O(N*HD), cheap vs. the N^2 kernel).
    f_all = fe[:, :HD]                                           # (N, HD) f32
    el_t = jnp.transpose(fe[:, HD:HD + H])                       # (H, N)  f32
    er = fe[:, HD + H:HD + 2 * H]                                # (N, H)  f32
    # f streamed as bf16 in (H, N, D_out) so f_ref[h] is a free leading-axis
    # view (no 32-wide lane slices) and the aggregation matmul is bf16 on MXU.
    f_hnd = jnp.transpose(f_all.reshape(N, H, D_out), (1, 0, 2)).astype(jnp.bfloat16)
    bias2d = bias.reshape(1, HD).astype(jnp.float32)

    # ---- kernel 2: online-softmax attention + aggregation -------------------
    if tile_v is None or tile_u is None:
        auto_v, auto_u = _auto_tiles(N)
        tile_v = auto_v if tile_v is None else tile_v
        tile_u = auto_u if tile_u is None else tile_u
    assert N % tile_v == 0 and N % tile_u == 0, "tiles must divide N"
    nv, nu = N // tile_v, N // tile_u

    # Per-(dst-tile, src-tile) occupancy table for block skipping; can be
    # precomputed once per graph and reused across layers / calls.
    if block_occupancy is None:
        block_occupancy = (adj.astype(jnp.int32)
                           .reshape(nv, tile_v, nu, tile_u)
                           .sum(axis=(1, 3)) > 0).astype(jnp.int32)

    try:
        out2d = _attn_call(block_occupancy, el_t, er, f_hnd, adj, bias2d,
                           tile_v, tile_u, H, D_out, True)
    except Exception:   # fall back without single-buffered bias
        out2d = _attn_call(block_occupancy, el_t, er, f_hnd, adj, bias2d,
                           tile_v, tile_u, H, D_out, False)

    # (N, H*D_out) -> (N, H, D_out): same memory layout, free reshape.
    return out2d.reshape(N, H, D_out)


# --------------------------------------------------------------------------
# Pure-JAX reference (same math, dense adjacency)
# --------------------------------------------------------------------------
def gat_conv_reference(x, w_per_head, attn_l, attn_r, adj, bias):
    f = jnp.einsum('nd,hdo->nho', x, w_per_head)                 # (N, H, D_out)
    el = jnp.sum(f * attn_l[None], axis=-1)                      # (N, H)
    er = jnp.sum(f * attn_r[None], axis=-1)                      # (N, H)
    e = el[None, :, :] + er[:, None, :]                          # (dst, src, H)
    e = jnp.where(e > 0, e, NEGATIVE_SLOPE * e)
    mask = adj[:, :, None] > 0
    e = jnp.where(mask, e, -jnp.inf)
    a = jax.nn.softmax(e, axis=1)
    a = jnp.where(mask, a, 0.0)
    rst = jnp.einsum('vuh,uho->vho', a, f)
    return rst + bias[None]


if __name__ == "__main__":
    # Small, deterministic problem; N chosen so the dst- and src-tiled grid
    # (and the online-softmax accumulation across src tiles) is exercised.
    N, D_in, H, D_out = 256, 64, 4, 32

    key = jax.random.PRNGKey(0)
    k_x, k_w, k_al, k_ar, k_adj, k_b = jax.random.split(key, 6)

    # Node features.
    x = jax.random.normal(k_x, (N, D_in), dtype=jnp.float32)

    # fc.weight: PyTorch shape (H*D_out, D_in), xavier_normal_ with gain=sqrt(2).
    gain = jnp.sqrt(2.0)
    std_fc = gain * jnp.sqrt(2.0 / (D_in + H * D_out))
    fc_weight = std_fc * jax.random.normal(k_w, (H * D_out, D_in), jnp.float32)
    # Per-head weight slices: (H, D_in, D_out), consistent with fc(x).view(-1,H,D_out).
    w_per_head = jnp.transpose(fc_weight.T.reshape(D_in, H, D_out), (1, 0, 2))

    # attn_l / attn_r: PyTorch shape (1, H, D_out), xavier_normal_.
    std_attn = gain * jnp.sqrt(2.0 / (H * D_out + D_out))
    attn_l = std_attn * jax.random.normal(k_al, (H, D_out), jnp.float32)
    attn_r = std_attn * jax.random.normal(k_ar, (H, D_out), jnp.float32)

    # Small non-zero bias so the bias-add path is actually validated.
    bias = 0.05 * jax.random.normal(k_b, (H, D_out), jnp.float32)

    # Random sparse graph (dense int8 mask) with self-loops so every node has
    # in-degree >= 1 (the module forbids zero-in-degree nodes).  One tile-sized
    # rectangle is zeroed so the occupancy-based block-skip path is exercised.
    adj_rand = jax.random.uniform(k_adj, (N, N)) < 0.1
    adj = jnp.logical_or(adj_rand, jnp.eye(N, dtype=bool)).astype(jnp.int8)
    adj = adj.at[:64, 128:].set(0)   # block (dst tile 0, src tile 1) is empty

    # Tiles smaller than N so the multi-step (dst, src) grid and online softmax
    # are exercised; tile_v is 32-aligned (int8 adjacency), tile_u 128-aligned.
    out = gat_conv_pallas(x, w_per_head, attn_l, attn_r, adj, bias,
                          tile_m=64, tile_v=64, tile_u=128)
    out = jax.block_until_ready(out)

    ref = gat_conv_reference(x, w_per_head, attn_l, attn_r, adj, bias)
    assert out.shape == (N, H, D_out)
    err = float(jnp.max(jnp.abs(out - ref)))
    # Tolerance relaxed vs. the pure-f32 version because f and the attention
    # probabilities are fed to the MXU in bf16 (f32 accumulation).
    assert jnp.allclose(out, ref, atol=2e-2, rtol=2e-2), f"max abs err {err}"

    print("KERNEL_OK")
</pallas_src>

<mosaic_0001>
module attributes {stable_mosaic.version = 11 : i64} {
  func.func @_proj_kernel(%arg0: i32, %arg1: memref<64x64xf32, #tpu.memory_space<vmem>>, %arg2: memref<64x256xf32, #tpu.memory_space<vmem>>, %arg3: memref<64x256xf32, #tpu.memory_space<vmem>>) attributes {dimension_semantics = [#tpu.dimension_semantics<parallel>], iteration_bounds = array<i64: 4>, scalar_prefetch = 0 : i64, scratch_operands = 0 : i64, tpu.core_type = #tpu.core_type<tc>, window_params = [{transform_indices = @transform_0, window_bounds = array<i64: 64, 64>}, {pipeline_mode = #tpu.pipeline_mode<synchronous>, transform_indices = @transform_1, window_bounds = array<i64: 64, 256>}, {transform_indices = @transform_2, window_bounds = array<i64: 64, 256>}]} {
    %c0 = arith.constant 0 : index
    %c0_0 = arith.constant 0 : index
    %0 = vector.load %arg1[%c0, %c0_0] : memref<64x64xf32, #tpu.memory_space<vmem>>, vector<64x64xf32>
    %c0_1 = arith.constant 0 : index
    %c0_2 = arith.constant 0 : index
    %1 = vector.load %arg2[%c0_1, %c0_2] : memref<64x256xf32, #tpu.memory_space<vmem>>, vector<64x256xf32>
    %cst = arith.constant dense<0.000000e+00> : vector<64x256xf32>
    %2 = tpu.matmul %0, %1, %cst {dimension_numbers = #tpu.dot_dimension_numbers<[1], [0], [0], [1], [0, 0, 1, 1], [], []>} : vector<64x64xf32>, vector<64x256xf32>, vector<64x256xf32> -> vector<64x256xf32>
    %c0_3 = arith.constant 0 : index
    %c0_4 = arith.constant 0 : index
    %3 = vector.load %arg3[%c0_3, %c0_4] : memref<64x256xf32, #tpu.memory_space<vmem>>, vector<64x256xf32>
    tpu.vector_store %arg3[%c0_3, %c0_4], %2 {strides = array<i32>} : memref<64x256xf32, #tpu.memory_space<vmem>>, vector<64x256xf32>,
    return
  }
  func.func @transform_0(%arg0: i32) -> (i32, i32) {
    %c0_i32 = arith.constant 0 : i32
    %c0_i32_0 = arith.constant 0 : i32
    return %arg0, %c0_i32 : i32, i32
  }
  func.func @transform_1(%arg0: i32) -> (i32, i32) {
    %c0_i32 = arith.constant 0 : i32
    %c0_i32_0 = arith.constant 0 : i32
    %c0_i32_1 = arith.constant 0 : i32
    return %c0_i32, %c0_i32_0 : i32, i32
  }
  func.func @transform_2(%arg0: i32) -> (i32, i32) {
    %c0_i32 = arith.constant 0 : i32
    %c0_i32_0 = arith.constant 0 : i32
    return %arg0, %c0_i32 : i32, i32
  }
}

module attributes {stable_mosaic.version = 11 : i64} {
  func.func @_proj_kernel(%arg0: i32, %arg1: memref<64x64xf32, #tpu.memory_space<vmem>>, %arg2: memref<64x256xf32, #tpu.memory_space<vmem>>, %arg3: memref<64x256xf32, #tpu.memory_space<vmem>>) attributes {dimension_semantics = [#tpu.dimension_semantics<parallel>], iteration_bounds = array<i64: 4>, scalar_prefetch = 0 : i64, scratch_operands = 0 : i64, tpu.core_type = #tpu.core_type<tc>, window_params = [{transform_indices = @transform_0, window_bounds = array<i64: 64, 64>}, {pipeline_mode = #tpu.pipeline_mode<synchronous>, transform_indices = @transform_1, window_bounds = array<i64: 64, 256>}, {transform_indices = @transform_2, window_bounds = array<i64: 64, 256>}]} {
    %c0 = arith.constant 0 : index
    %c0_0 = arith.constant 0 : index
    %0 = vector.load %arg1[%c0, %c0_0] : memref<64x64xf32, #tpu.memory_space<vmem>>, vector<64x64xf32>
    %c0_1 = arith.constant 0 : index
    %c0_2 = arith.constant 0 : index
    %1 = vector.load %arg2[%c0_1, %c0_2] : memref<64x256xf32, #tpu.memory_space<vmem>>, vector<64x256xf32>
    %cst = arith.constant dense<0.000000e+00> : vector<64x256xf32>
    %2 = tpu.matmul %0, %1, %cst {dimension_numbers = #tpu.dot_dimension_numbers<[1], [0], [0], [1], [0, 0, 1, 1], [], []>} : vector<64x64xf32>, vector<64x256xf32>, vector<64x256xf32> -> vector<64x256xf32>
    %c0_3 = arith.constant 0 : index
    %c0_4 = arith.constant 0 : index
    %3 = vector.load %arg3[%c0_3, %c0_4] : memref<64x256xf32, #tpu.memory_space<vmem>>, vector<64x256xf32>
    tpu.vector_store %arg3[%c0_3, %c0_4], %2 {strides = array<i32>} : memref<64x256xf32, #tpu.memory_space<vmem>>, vector<64x256xf32>,
    return
  }
  func.func @transform_0(%arg0: i32) -> (i32, i32) {
    %c0_i32 = arith.constant 0 : i32
    %c0_i32_0 = arith.constant 0 : i32
    return %arg0, %c0_i32 : i32, i32
  }
  func.func @transform_1(%arg0: i32) -> (i32, i32) {
    %c0_i32 = arith.constant 0 : i32
    %c0_i32_0 = arith.constant 0 : i32
    %c0_i32_1 = arith.constant 0 : i32
    return %c0_i32, %c0_i32_0 : i32, i32
  }
  func.func @transform_2(%arg0: i32) -> (i32, i32) {
    %c0_i32 = arith.constant 0 : i32
    %c0_i32_0 = arith.constant 0 : i32
    return %arg0, %c0_i32 : i32, i32
  }
}

</mosaic_0001>

<bundles_post_ra>
// kernel: tpu_custom_call.1
= control target key start
LH: loop header
LB: loop body
LE: loop exit
PB: predicated region body
PF: predicated region fallthrough
CT: control target
= control target key end

     0   :  { %7 = vsyncpa [#allocation3], 0  ;;  %s752_s0 = inlined_call_operand.vmem [shape: f32[256,64], index: 0, kind: input, shape index: {}]   ;;  %s753_s1 = inlined_call_operand.vmem [shape: f32[64,256], index: 1, kind: input, shape index: {}]   ;;  %s754_s2 = inlined_call_operand.hbm [shape: f32[256,256], index: 2, kind: output, shape index: {}]  }
   0x1   :  { %9 = vsyncpa [#allocation3 + $0x1], 0  ;;  %s562_s9 = smov 0   ;;  %s564_s10 = smov 0  }
   0x2   :  { %s566_s11 = smov 0   ;;  %s568_s12 = smov 0  }
   0x3 LB: > { %s583_s13 = sadd.s32 4294967295, %s541_s12   ;;  %s400_s14 = sadd.s32 4294967294, %s541_s12   ;;  %s541_s12 = sphi %s568_s12, %s760_s12   ;;  %s537_s11 = sphi %s566_s11, %s759_s11   ;;  %s533_s10 = sphi %s564_s10, %s758_s10   ;;  %s529_s9 = sphi %s562_s9, %s757_s9  }
   0x4   : > { %s587_s15 = sadd.s32 1, %s541_s12   ;;  %s69_s16 = sadd.s32 1, %s537_s11 }
   0x5   : > { %s66_s17 = ssub.s32 %s541_s12, %s587_s15  ;;  %p79_p0 = scmp.ne.s32.totalorder %s537_s11, %s533_s10 }
   0x6   : > { %p67_p1 = scmp.eq.s32.totalorder %s66_s17, 0  ;;  %p80_p2 = scmp.eq.s32.totalorder %s583_s13, 3 }
   0x7   : > { %p85_p3 = scmp.ne.s32.totalorder %s533_s10, %s529_s9  ;;  %p86_p4 = scmp.eq.s32.totalorder %s400_s14, 3 }
   0x8   : > { %s598_s18 = scalar_select %p67_p1, %s537_s11, %s69_s16  }
   0x9   : > { %p600_p5 = por %p80_p2, %p79_p0  ;;  %p604_p6 = por %p86_p4, %p85_p3 }
   0xa   : > { %p403_p7 = scmp.ge.s32.totalorder %s541_s12, 1  ;;  %p116_p8 = scmp.lt.s32.totalorder %s541_s12, 5 }
   0xc   : > { %p117_p9 = pnand %p403_p7, %p116_p8 }
   0xd   : > { %s405_s27 = sshll.u32 (!%p117_p9), %s583_s13, 3  ;;  %s135_s17 = sand.u32 (!%p117_p9), 1, %s533_s10  }
   0xe   : > { %120 = sbr.rel (%p117_p9) target bundleno = 258 (0x102), region = 28  ;;  %p139_p10 = scmp.lt.s32.totalorder (!%p117_p9), %s405_s27, 31 }
   0xf   : > { %s404_s21 = sshll.u32 (!%p117_p9), %s135_s17, 7  ;;  %s422_s23 = sshll.u32 (!%p117_p9), %s583_s13, 11 }
  0x10   : > { %s683_s22 = scalar_lea.vmem (!%p117_p9), [#allocation2], %s404_s21  ;;  %s712_s13 = scalar_lea.sflag (!%p117_p9), [#allocation3], %s135_s17 }
  0x11   : > { %s338_s24 = sshll.u32 (!%p117_p9), %s683_s22, 4  ;;  %s544_s30 = smov (!%p117_p9), [#allocation2]   ;;  %s704_s24 = int_to_ptr.vmem [resolvable:$true] %s338_s24 }
  0x12   : > { %s481_s29 = scalar_lea.vmem (!%p117_p9), %s704_s24, 2048  ;;  %s485_s3 = sshll.u32 (!%p117_p9), %s544_s30, 4  ;;  %s486_s3 = int_to_ptr.vmem [resolvable:$false] %s485_s3 }
  0x13   : > { %v168_v0 = vld [vmem:[%s753_s1 + $0x78] sm:$0xff]  ;;  %v167_v1 = vld [vmem:[%s753_s1 + $0x70] sm:$0xff]  ;;  %v166_v2 = vld [vmem:[%s753_s1 + $0x68] sm:$0xff]  ;;  %s762_s27 = smov (!%p139_p10, %s405_s27), 31  ;;  %vm169_vm0 = vcmask 523264   ;;  %v543_v18 = vmov 0.0   ;;  %p482_p11 = scmp.ne.s32.totalorder %s704_s24, %s481_s29 }
  0x14   : > { %210 = vmatprep.subr.mxu0 %v168_v0  ;;  %423 = vmatprep.subr.mxu1 %v168_v0  ;;  %v165_v3 = vld [vmem:[%s753_s1 + $0x60] sm:$0xff]  ;;  %v164_v4 = vld [vmem:[%s753_s1 + $0x58] sm:$0xff]  ;;  %v163_v5 = vld [vmem:[%s753_s1 + $0x50] sm:$0xff]  ;;  %s406_s28 = sshll.u32 %s762_s27, 3  ;;  %s487_s4 = scalar_lea.vmem %s486_s3, 4096 }
  0x15   : > { %211 = vmatpush1.msra.mxu0 %v167_v1  ;;  %431 = vmatpush1.msra.mxu1 %v167_v1  ;;  %v162_v6 = vld [vmem:[%s753_s1 + $0x48] sm:$0xff]  ;;  %v161_v7 = vld [vmem:[%s753_s1 + $0x40] sm:$0xff]  ;;  %v160_v8 = vld [vmem:[%s753_s1 + $0x38] sm:$0xff]  ;;  %s659_s8 = scalar_lea.vmem %s752_s0, %s406_s28  ;;  %s702_s28 = scalar_lea.hbm %s754_s2, %s422_s23 }
  0x16   : > { %212 = vmatprep.subr.mxu0 %v166_v2  ;;  %424 = vmatprep.subr.mxu1 %v166_v2  ;;  %v159_v9 = vld [vmem:[%s753_s1 + $0x30] sm:$0xff]  ;;  %v158_v10 = vld [vmem:[%s753_s1 + $0x28] sm:$0xff]  ;;  %v157_v11 = vld [vmem:[%s753_s1 + $0x20] sm:$0xff]  ;;  %p483_p12 = pnand %p482_p11, %p600_p5  ;;  %p488_p0 = scmp.lt.s32.totalorder %s704_s24, %s486_s3 }
  0x17   : > { %213 = vmatpush1.msra.mxu0 %v165_v3  ;;  %432 = vmatpush1.msra.mxu1 %v165_v3  ;;  %v156_v12 = vld [vmem:[%s753_s1 + $0x18] sm:$0xff]  ;;  %v155_v13 = vld [vmem:[%s753_s1 + $0x10] sm:$0xff]  ;;  %v154_v14 = vld [vmem:[%s753_s1 + $0x8] sm:$0xff]  ;;  %p489_p1 = scmp.lt.s32.totalorder %s487_s4, %s481_s29 }
  0x18   : > { %214 = vmatprep.subr.mxu0 %v164_v4  ;;  %425 = vmatprep.subr.mxu1 %v164_v4  ;;  %v153_v15 = vld [vmem:[%s753_s1] sm:$0xff]  ;;  %v146_v19 = vld [vmem:[%s659_s8 + $0x8] sm:$0xff]  ;;  %v147_v21 = vld [vmem:[%s659_s8 + $0x10] sm:$0xff]  ;;  %p484_p13 = pneg %p483_p12 }
  0x19   : > { %215 = vmatpush1.msra.mxu0 %v163_v5  ;;  %433 = vmatpush1.msra.mxu1 %v163_v5  ;;  %v145_v16 = vld [vmem:[%s659_s8] sm:$0xff]  ;;  %v150_v20 = vld [vmem:[%s659_s8 + $0x28] sm:$0xff]  ;;  %v151_v22 = vld [vmem:[%s659_s8 + $0x30] sm:$0xff]  ;;  %p490_p2 = por %p489_p1, %p488_p0 }
  0x1a   : > { %216 = vmatprep.subr.mxu0 %v162_v6  ;;  %426 = vmatprep.subr.mxu1 %v162_v6  ;;  %v149_v17 = vld [vmem:[%s659_s8 + $0x20] sm:$0xff]  ;;  %v148_v23 = vld [vmem:[%s659_s8 + $0x18] sm:$0xff] }
  0x1b   : > { %217 = vmatpush1.msra.mxu0 %v161_v7  ;;  %434 = vmatpush1.msra.mxu1 %v161_v7  ;;  %v152_v24 = vld [vmem:[%s659_s8 + $0x38] sm:$0xff]  ;;  %p491_p3 = pnand %p490_p2, %p484_p13 }
  0x1c   : > { %218 = vmatprep.subr.mxu0 %v160_v8  ;;  %427 = vmatprep.subr.mxu1 %v160_v8 }
  0x1d   : > { %219 = vmatpush1.msra.mxu0 %v159_v9  ;;  %435 = vmatpush1.msra.mxu1 %v159_v9 }
  0x1e   : > { %220 = vmatprep.subr.mxu0 %v158_v10  ;;  %428 = vmatprep.subr.mxu1 %v158_v10 }
  0x1f   : > { %221 = vmatpush1.msra.mxu0 %v157_v11  ;;  %436 = vmatpush1.msra.mxu1 %v157_v11 }
  0x20   : > { %222 = vmatprep.subr.mxu0 %v156_v12  ;;  %429 = vmatprep.subr.mxu1 %v156_v12 }
  0x21   : > { %223 = vmatpush1.msra.mxu0 %v155_v13  ;;  %437 = vmatpush1.msra.mxu1 %v155_v13 }
  0x22   : > { %224 = vmatprep.subr.mxu0 %v154_v14  ;;  %430 = vmatprep.subr.mxu1 %v154_v14 }
  0x23   : > { %225 = vmatpush1.msra.mxu0 %v153_v15  ;;  %438 = vmatpush1.msra.mxu1 %v153_v15 }
  0x24   : > { %258 = vmatprep.mubr.f32.mxu0 %v543_v18  ;;  %282 = vmatprep.mubr.f32.mxu1 %v543_v18 }
  0x25   : > { %407 = vmatmul.mubr.msk.f32.vlgmr.msra.gmra.mxu0 %vm169_vm0, %v145_v16  ;;  %411 = vmatmul.mubr.msk.f32.vlgmr.msra.gmra.mxu1 %vm169_vm0, %v149_v17 }
  0x26   : > { %264 = vmatprep.mubr.f32.mxu0 %v543_v18  ;;  %288 = vmatprep.mubr.f32.mxu1 %v543_v18 }
  0x29   : > { %408 = vmatmul.mubr.msk.f32.gmra.mxu0 %vm169_vm0, %v146_v19  ;;  %412 = vmatmul.mubr.msk.f32.gmra.mxu1 %vm169_vm0, %v150_v20 }
  0x2a   : > { %270 = vmatprep.mubr.f32.mxu0 %v543_v18  ;;  %294 = vmatprep.mubr.f32.mxu1 %v543_v18 }
  0x2d   : > { %409 = vmatmul.mubr.msk.f32.gmra.mxu0 %vm169_vm0, %v147_v21  ;;  %413 = vmatmul.mubr.msk.f32.gmra.mxu1 %vm169_vm0, %v151_v22 }
  0x2e   : > { %276 = vmatprep.mubr.f32.mxu0 %v543_v18  ;;  %300 = vmatprep.mubr.f32.mxu1 %v543_v18 }
  0x31   : > { %410 = vmatmul.mubr.msk.f32.gmra.mxu0 %vm169_vm0, %v148_v23  ;;  %414 = vmatmul.mubr.msk.f32.gmra.mxu1 %vm169_vm0, %v152_v24 }
  0xe5   : > { %v260_v25 = vpop.f32.mrf.mxu0  ;;  %v284_v26 = vpop.f32.mrf.mxu1 }
  0xe6   : > { %307 = vst [vmem:[%s683_s22] sm:$0xff] %v260_v25  ;;  %315 = vst [vmem:[%s683_s22 + $0x40] sm:$0xff] %v284_v26 }
  0xe7   : > { %v262_v27 = vpop.f32.mrf.mxu0  ;;  %v286_v28 = vpop.f32.mrf.mxu1 }
  0xe8   : > { %308 = vst [vmem:[%s683_s22 + $0x8] sm:$0xff] %v262_v27  ;;  %316 = vst [vmem:[%s683_s22 + $0x48] sm:$0xff] %v286_v28 }
  0xe9   : > { %v266_v29 = vpop.f32.mrf.mxu0  ;;  %v290_v30 = vpop.f32.mrf.mxu1 }
  0xea   : > { %309 = vst [vmem:[%s683_s22 + $0x10] sm:$0xff] %v266_v29  ;;  %317 = vst [vmem:[%s683_s22 + $0x50] sm:$0xff] %v290_v30 }
  0xeb   : > { %v268_v31 = vpop.f32.mrf.mxu0  ;;  %v292_v32 = vpop.f32.mrf.mxu1 }
  0xec   : > { %310 = vst [vmem:[%s683_s22 + $0x18] sm:$0xff] %v268_v31  ;;  %318 = vst [vmem:[%s683_s22 + $0x58] sm:$0xff] %v292_v32 }
  0xed   : > { %v272_v33 = vpop.f32.mrf.mxu0  ;;  %v296_v34 = vpop.f32.mrf.mxu1 }
  0xee   : > { %311 = vst [vmem:[%s683_s22 + $0x20] sm:$0xff] %v272_v33  ;;  %319 = vst [vmem:[%s683_s22 + $0x60] sm:$0xff] %v296_v34 }
  0xef   : > { %v274_v35 = vpop.f32.mrf.mxu0  ;;  %v298_v36 = vpop.f32.mrf.mxu1 }
  0xf0   : > { %312 = vst [vmem:[%s683_s22 + $0x28] sm:$0xff] %v274_v35  ;;  %320 = vst [vmem:[%s683_s22 + $0x68] sm:$0xff] %v298_v36 }
  0xf1   : > { %v278_v37 = vpop.f32.mrf.mxu0  ;;  %v302_v38 = vpop.f32.mrf.mxu1 }
  0xf2   : > { %313 = vst [vmem:[%s683_s22 + $0x30] sm:$0xff] %v278_v37  ;;  %321 = vst [vmem:[%s683_s22 + $0x70] sm:$0xff] %v302_v38 }
  0xf3   : > { %v280_v39 = vpop.f32.mrf.mxu0  ;;  %v304_v40 = vpop.f32.mrf.mxu1 }
  0xf4   : > { %314 = vst [vmem:[%s683_s22 + $0x38] sm:$0xff] %v280_v39  ;;  %322 = vst [vmem:[%s683_s22 + $0x78] sm:$0xff] %v304_v40 }
  0xf5   : > { %494 = shalt.err (!%p491_p3)
}
  0xf6   : > { %s495_s5 = scalar_lea.hbm %s702_s28, 2048  ;;  %s499_s27 = scalar_lea.hbm %s754_s2, 8192 }
  0xf7   : > { %p496_p4 = scmp.ne.s32.totalorder %s702_s28, %s495_s5  ;;  %p500_p9 = scmp.lt.s32.totalorder %s702_s28, %s754_s2 }
  0xf8   : > { %p501_p10 = scmp.lt.s32.totalorder %s499_s27, %s495_s5 }
  0xf9   : > { %p497_p7 = pnand %p496_p4, %p600_p5 }
  0xfa   : > { %p502_p11 = por %p501_p10, %p500_p9 }
  0xfb   : > { %p498_p8 = pneg %p497_p7 }
  0xfd   : > { %p503_p12 = pnand %p502_p11, %p498_p8 }
  0xff   : > { %506 = shalt.err (!%p503_p12)
}
 0x100   : > { %s545_s16 = smov 256   ;;  %s546_s17 = smov 16  }
 0x101   : > { %439 = dma.vmem_to_hbm [thread:$0]  (%p600_p5), %s704_s24, 2048, %s702_s28, %s712_s13, %s545_s16, %s545_s16, %s546_s17  }
 0x102 PF: > { %p445_p13 = scmp.ge.s32.totalorder %s541_s12, 2  ;;  %s353_s21 = sand.u32 1, %s529_s9  }
 0x103   : > { %s354_s22 = scalar_lea.sflag [#allocation3], %s353_s21 }
 0x104   : > { %p442_p0 = pnand %p445_p13, %p604_p6 }
 0x106   : > { %p443_p1 = pneg %p442_p0 }
 0x108   : > { %524 = dma.done.wait (%p443_p1), %s354_s22, 2048  }
 0x109   : > { %526 = vsyncadd (%p443_p1), %s354_s22, 4294965248  ;;  %p12_p2 = scmp.ge.s32.totalorder %s587_s15, 6   ;;  %s757_s9 = smov %s533_s10 }
 0x10a   : > { %s758_s10 = smov %s537_s11  ;;  %s759_s11 = smov %s598_s18 }
 0x10b   : > { %s760_s12 = smov %s587_s15  ;;  %14 = sbr.rel (!%p12_p2) target bundleno = 3 (0x3), region = 63 }
 0x110   :  { %359 = vsyncpa [#allocation3], 1 }
 0x111   :  { %361 = vsyncpa [#allocation3 + $0x1], 1 }

// kernel: tpu_custom_call.1
= control target key start
LH: loop header
LB: loop body
LE: loop exit
PB: predicated region body
PF: predicated region fallthrough
CT: control target
= control target key end

     0   :  { %7 = vsyncpa [#allocation3], 0  ;;  %s752_s0 = inlined_call_operand.vmem [shape: f32[256,64], index: 0, kind: input, shape index: {}]   ;;  %s753_s1 = inlined_call_operand.vmem [shape: f32[64,256], index: 1, kind: input, shape index: {}]   ;;  %s754_s2 = inlined_call_operand.hbm [shape: f32[256,256], index: 2, kind: output, shape index: {}]  }
   0x1   :  { %9 = vsyncpa [#allocation3 + $0x1], 0  ;;  %s562_s9 = smov 0   ;;  %s564_s10 = smov 0  }
   0x2   :  { %s566_s11 = smov 0   ;;  %s568_s12 = smov 0  }
   0x3 LB: > { %s583_s13 = sadd.s32 4294967295, %s541_s12   ;;  %s400_s14 = sadd.s32 4294967294, %s541_s12   ;;  %s541_s12 = sphi %s568_s12, %s760_s12   ;;  %s537_s11 = sphi %s566_s11, %s759_s11   ;;  %s533_s10 = sphi %s564_s10, %s758_s10   ;;  %s529_s9 = sphi %s562_s9, %s757_s9  }
   0x4   : > { %s587_s15 = sadd.s32 1, %s541_s12   ;;  %s69_s16 = sadd.s32 1, %s537_s11 }
   0x5   : > { %s66_s17 = ssub.s32 %s541_s12, %s587_s15  ;;  %p79_p0 = scmp.ne.s32.totalorder %s537_s11, %s533_s10 }
   0x6   : > { %p67_p1 = scmp.eq.s32.totalorder %s66_s17, 0  ;;  %p80_p2 = scmp.eq.s32.totalorder %s583_s13, 3 }
   0x7   : > { %p85_p3 = scmp.ne.s32.totalorder %s533_s10, %s529_s9  ;;  %p86_p4 = scmp.eq.s32.totalorder %s400_s14, 3 }
   0x8   : > { %s598_s18 = scalar_select %p67_p1, %s537_s11, %s69_s16  }
   0x9   : > { %p600_p5 = por %p80_p2, %p79_p0  ;;  %p604_p6 = por %p86_p4, %p85_p3 }
   0xa   : > { %p403_p7 = scmp.ge.s32.totalorder %s541_s12, 1  ;;  %p116_p8 = scmp.lt.s32.totalorder %s541_s12, 5 }
   0xc   : > { %p117_p9 = pnand %p403_p7, %p116_p8 }
   0xd   : > { %s405_s27 = sshll.u32 (!%p117_p9), %s583_s13, 3  ;;  %s135_s17 = sand.u32 (!%p117_p9), 1, %s533_s10  }
   0xe   : > { %120 = sbr.rel (%p117_p9) target bundleno = 258 (0x102), region = 28  ;;  %p139_p10 = scmp.lt.s32.totalorder (!%p117_p9), %s405_s27, 31 }
   0xf   : > { %s404_s21 = sshll.u32 (!%p117_p9), %s135_s17, 7  ;;  %s422_s23 = sshll.u32 (!%p117_p9), %s583_s13, 11 }
  0x10   : > { %s683_s22 = scalar_lea.vmem (!%p117_p9), [#allocation2], %s404_s21  ;;  %s712_s13 = scalar_lea.sflag (!%p117_p9), [#allocation3], %s135_s17 }
  0x11   : > { %s338_s24 = sshll.u32 (!%p117_p9), %s683_s22, 4  ;;  %s544_s30 = smov (!%p117_p9), [#allocation2]   ;;  %s704_s24 = int_to_ptr.vmem [resolvable:$true] %s338_s24 }
  0x12   : > { %s481_s29 = scalar_lea.vmem (!%p117_p9), %s704_s24, 2048  ;;  %s485_s3 = sshll.u32 (!%p117_p9), %s544_s30, 4  ;;  %s486_s3 = int_to_ptr.vmem [resolvable:$false] %s485_s3 }
  0x13   : > { %v168_v0 = vld [vmem:[%s753_s1 + $0x78] sm:$0xff]  ;;  %v167_v1 = vld [vmem:[%s753_s1 + $0x70] sm:$0xff]  ;;  %v166_v2 = vld [vmem:[%s753_s1 + $0x68] sm:$0xff]  ;;  %s762_s27 = smov (!%p139_p10, %s405_s27), 31  ;;  %vm169_vm0 = vcmask 523264   ;;  %v543_v18 = vmov 0.0   ;;  %p482_p11 = scmp.ne.s32.totalorder %s704_s24, %s481_s29 }
  0x14   : > { %210 = vmatprep.subr.mxu0 %v168_v0  ;;  %423 = vmatprep.subr.mxu1 %v168_v0  ;;  %v165_v3 = vld [vmem:[%s753_s1 + $0x60] sm:$0xff]  ;;  %v164_v4 = vld [vmem:[%s753_s1 + $0x58] sm:$0xff]  ;;  %v163_v5 = vld [vmem:[%s753_s1 + $0x50] sm:$0xff]  ;;  %s406_s28 = sshll.u32 %s762_s27, 3  ;;  %s487_s4 = scalar_lea.vmem %s486_s3, 4096 }
  0x15   : > { %211 = vmatpush1.msra.mxu0 %v167_v1  ;;  %431 = vmatpush1.msra.mxu1 %v167_v1  ;;  %v162_v6 = vld [vmem:[%s753_s1 + $0x48] sm:$0xff]  ;;  %v161_v7 = vld [vmem:[%s753_s1 + $0x40] sm:$0xff]  ;;  %v160_v8 = vld [vmem:[%s753_s1 + $0x38] sm:$0xff]  ;;  %s659_s8 = scalar_lea.vmem %s752_s0, %s406_s28  ;;  %s702_s28 = scalar_lea.hbm %s754_s2, %s422_s23 }
  0x16   : > { %212 = vmatprep.subr.mxu0 %v166_v2  ;;  %424 = vmatprep.subr.mxu1 %v166_v2  ;;  %v159_v9 = vld [vmem:[%s753_s1 + $0x30] sm:$0xff]  ;;  %v158_v10 = vld [vmem:[%s753_s1 + $0x28] sm:$0xff]  ;;  %v157_v11 = vld [vmem:[%s753_s1 + $0x20] sm:$0xff]  ;;  %p483_p12 = pnand %p482_p11, %p600_p5  ;;  %p488_p0 = scmp.lt.s32.totalorder %s704_s24, %s486_s3 }
  0x17   : > { %213 = vmatpush1.msra.mxu0 %v165_v3  ;;  %432 = vmatpush1.msra.mxu1 %v165_v3  ;;  %v156_v12 = vld [vmem:[%s753_s1 + $0x18] sm:$0xff]  ;;  %v155_v13 = vld [vmem:[%s753_s1 + $0x10] sm:$0xff]  ;;  %v154_v14 = vld [vmem:[%s753_s1 + $0x8] sm:$0xff]  ;;  %p489_p1 = scmp.lt.s32.totalorder %s487_s4, %s481_s29 }
  0x18   : > { %214 = vmatprep.subr.mxu0 %v164_v4  ;;  %425 = vmatprep.subr.mxu1 %v164_v4  ;;  %v153_v15 = vld [vmem:[%s753_s1] sm:$0xff]  ;;  %v146_v19 = vld [vmem:[%s659_s8 + $0x8] sm:$0xff]  ;;  %v147_v21 = vld [vmem:[%s659_s8 + $0x10] sm:$0xff]  ;;  %p484_p13 = pneg %p483_p12 }
  0x19   : > { %215 = vmatpush1.msra.mxu0 %v163_v5  ;;  %433 = vmatpush1.msra.mxu1 %v163_v5  ;;  %v145_v16 = vld [vmem:[%s659_s8] sm:$0xff]  ;;  %v150_v20 = vld [vmem:[%s659_s8 + $0x28] sm:$0xff]  ;;  %v151_v22 = vld [vmem:[%s659_s8 + $0x30] sm:$0xff]  ;;  %p490_p2 = por %p489_p1, %p488_p0 }
  0x1a   : > { %216 = vmatprep.subr.mxu0 %v162_v6  ;;  %426 = vmatprep.subr.mxu1 %v162_v6  ;;  %v149_v17 = vld [vmem:[%s659_s8 + $0x20] sm:$0xff]  ;;  %v148_v23 = vld [vmem:[%s659_s8 + $0x18] sm:$0xff] }
  0x1b   : > { %217 = vmatpush1.msra.mxu0 %v161_v7  ;;  %434 = vmatpush1.msra.mxu1 %v161_v7  ;;  %v152_v24 = vld [vmem:[%s659_s8 + $0x38] sm:$0xff]  ;;  %p491_p3 = pnand %p490_p2, %p484_p13 }
  0x1c   : > { %218 = vmatprep.subr.mxu0 %v160_v8  ;;  %427 = vmatprep.subr.mxu1 %v160_v8 }
  0x1d   : > { %219 = vmatpush1.msra.mxu0 %v159_v9  ;;  %435 = vmatpush1.msra.mxu1 %v159_v9 }
  0x1e   : > { %220 = vmatprep.subr.mxu0 %v158_v10  ;;  %428 = vmatprep.subr.mxu1 %v158_v10 }
  0x1f   : > { %221 = vmatpush1.msra.mxu0 %v157_v11  ;;  %436 = vmatpush1.msra.mxu1 %v157_v11 }
  0x20   : > { %222 = vmatprep.subr.mxu0 %v156_v12  ;;  %429 = vmatprep.subr.mxu1 %v156_v12 }
  0x21   : > { %223 = vmatpush1.msra.mxu0 %v155_v13  ;;  %437 = vmatpush1.msra.mxu1 %v155_v13 }
  0x22   : > { %224 = vmatprep.subr.mxu0 %v154_v14  ;;  %430 = vmatprep.subr.mxu1 %v154_v14 }
  0x23   : > { %225 = vmatpush1.msra.mxu0 %v153_v15  ;;  %438 = vmatpush1.msra.mxu1 %v153_v15 }
  0x24   : > { %258 = vmatprep.mubr.f32.mxu0 %v543_v18  ;;  %282 = vmatprep.mubr.f32.mxu1 %v543_v18 }
  0x25   : > { %407 = vmatmul.mubr.msk.f32.vlgmr.msra.gmra.mxu0 %vm169_vm0, %v145_v16  ;;  %411 = vmatmul.mubr.msk.f32.vlgmr.msra.gmra.mxu1 %vm169_vm0, %v149_v17 }
  0x26   : > { %264 = vmatprep.mubr.f32.mxu0 %v543_v18  ;;  %288 = vmatprep.mubr.f32.mxu1 %v543_v18 }
  0x29   : > { %408 = vmatmul.mubr.msk.f32.gmra.mxu0 %vm169_vm0, %v146_v19  ;;  %412 = vmatmul.mubr.msk.f32.gmra.mxu1 %vm169_vm0, %v150_v20 }
  0x2a   : > { %270 = vmatprep.mubr.f32.mxu0 %v543_v18  ;;  %294 = vmatprep.mubr.f32.mxu1 %v543_v18 }
  0x2d   : > { %409 = vmatmul.mubr.msk.f32.gmra.mxu0 %vm169_vm0, %v147_v21  ;;  %413 = vmatmul.mubr.msk.f32.gmra.mxu1 %vm169_vm0, %v151_v22 }
  0x2e   : > { %276 = vmatprep.mubr.f32.mxu0 %v543_v18  ;;  %300 = vmatprep.mubr.f32.mxu1 %v543_v18 }
  0x31   : > { %410 = vmatmul.mubr.msk.f32.gmra.mxu0 %vm169_vm0, %v148_v23  ;;  %414 = vmatmul.mubr.msk.f32.gmra.mxu1 %vm169_vm0, %v152_v24 }
  0xe5   : > { %v260_v25 = vpop.f32.mrf.mxu0  ;;  %v284_v26 = vpop.f32.mrf.mxu1 }
  0xe6   : > { %307 = vst [vmem:[%s683_s22] sm:$0xff] %v260_v25  ;;  %315 = vst [vmem:[%s683_s22 + $0x40] sm:$0xff] %v284_v26 }
  0xe7   : > { %v262_v27 = vpop.f32.mrf.mxu0  ;;  %v286_v28 = vpop.f32.mrf.mxu1 }
  0xe8   : > { %308 = vst [vmem:[%s683_s22 + $0x8] sm:$0xff] %v262_v27  ;;  %316 = vst [vmem:[%s683_s22 + $0x48] sm:$0xff] %v286_v28 }
  0xe9   : > { %v266_v29 = vpop.f32.mrf.mxu0  ;;  %v290_v30 = vpop.f32.mrf.mxu1 }
  0xea   : > { %309 = vst [vmem:[%s683_s22 + $0x10] sm:$0xff] %v266_v29  ;;  %317 = vst [vmem:[%s683_s22 + $0x50] sm:$0xff] %v290_v30 }
  0xeb   : > { %v268_v31 = vpop.f32.mrf.mxu0  ;;  %v292_v32 = vpop.f32.mrf.mxu1 }
  0xec   : > { %310 = vst [vmem:[%s683_s22 + $0x18] sm:$0xff] %v268_v31  ;;  %318 = vst [vmem:[%s683_s22 + $0x58] sm:$0xff] %v292_v32 }
  0xed   : > { %v272_v33 = vpop.f32.mrf.mxu0  ;;  %v296_v34 = vpop.f32.mrf.mxu1 }
  0xee   : > { %311 = vst [vmem:[%s683_s22 + $0x20] sm:$0xff] %v272_v33  ;;  %319 = vst [vmem:[%s683_s22 + $0x60] sm:$0xff] %v296_v34 }
  0xef   : > { %v274_v35 = vpop.f32.mrf.mxu0  ;;  %v298_v36 = vpop.f32.mrf.mxu1 }
  0xf0   : > { %312 = vst [vmem:[%s683_s22 + $0x28] sm:$0xff] %v274_v35  ;;  %320 = vst [vmem:[%s683_s22 + $0x68] sm:$0xff] %v298_v36 }
  0xf1   : > { %v278_v37 = vpop.f32.mrf.mxu0  ;;  %v302_v38 = vpop.f32.mrf.mxu1 }
  0xf2   : > { %313 = vst [vmem:[%s683_s22 + $0x30] sm:$0xff] %v278_v37  ;;  %321 = vst [vmem:[%s683_s22 + $0x70] sm:$0xff] %v302_v38 }
  0xf3   : > { %v280_v39 = vpop.f32.mrf.mxu0  ;;  %v304_v40 = vpop.f32.mrf.mxu1 }
  0xf4   : > { %314 = vst [vmem:[%s683_s22 + $0x38] sm:$0xff] %v280_v39  ;;  %322 = vst [vmem:[%s683_s22 + $0x78] sm:$0xff] %v304_v40 }
  0xf5   : > { %494 = shalt.err (!%p491_p3)
}
  0xf6   : > { %s495_s5 = scalar_lea.hbm %s702_s28, 2048  ;;  %s499_s27 = scalar_lea.hbm %s754_s2, 8192 }
  0xf7   : > { %p496_p4 = scmp.ne.s32.totalorder %s702_s28, %s495_s5  ;;  %p500_p9 = scmp.lt.s32.totalorder %s702_s28, %s754_s2 }
  0xf8   : > { %p501_p10 = scmp.lt.s32.totalorder %s499_s27, %s495_s5 }
  0xf9   : > { %p497_p7 = pnand %p496_p4, %p600_p5 }
  0xfa   : > { %p502_p11 = por %p501_p10, %p500_p9 }
  0xfb   : > { %p498_p8 = pneg %p497_p7 }
  0xfd   : > { %p503_p12 = pnand %p502_p11, %p498_p8 }
  0xff   : > { %506 = shalt.err (!%p503_p12)
}
 0x100   : > { %s545_s16 = smov 256   ;;  %s546_s17 = smov 16  }
 0x101   : > { %439 = dma.vmem_to_hbm [thread:$0]  (%p600_p5), %s704_s24, 2048, %s702_s28, %s712_s13, %s545_s16, %s545_s16, %s546_s17  }
 0x102 PF: > { %p445_p13 = scmp.ge.s32.totalorder %s541_s12, 2  ;;  %s353_s21 = sand.u32 1, %s529_s9  }
 0x103   : > { %s354_s22 = scalar_lea.sflag [#allocation3], %s353_s21 }
 0x104   : > { %p442_p0 = pnand %p445_p13, %p604_p6 }
 0x106   : > { %p443_p1 = pneg %p442_p0 }
 0x108   : > { %524 = dma.done.wait (%p443_p1), %s354_s22, 2048  }
 0x109   : > { %526 = vsyncadd (%p443_p1), %s354_s22, 4294965248  ;;  %p12_p2 = scmp.ge.s32.totalorder %s587_s15, 6   ;;  %s757_s9 = smov %s533_s10 }
 0x10a   : > { %s758_s10 = smov %s537_s11  ;;  %s759_s11 = smov %s598_s18 }
 0x10b   : > { %s760_s12 = smov %s587_s15  ;;  %14 = sbr.rel (!%p12_p2) target bundleno = 3 (0x3), region = 63 }
 0x110   :  { %359 = vsyncpa [#allocation3], 1 }
 0x111   :  { %361 = vsyncpa [#allocation3 + $0x1], 1 }

</bundles_post_ra>
